<compile_context>
chip_gen: v5e
topology: v5e:2x2
jax: 0.10.0
libtpu: 0.0.40
codegen_flags: <defaults>
</compile_context>

<pallas_src>
import math
import functools

import jax
import jax.numpy as jnp
from jax.experimental import pallas as pl
from jax.experimental.pallas import tpu as pltpu

_LANE = 128


def _round_up(x, m):
    return (x + m - 1) // m * m


def _fa_autoencoder_kernel(x_ref, w1_ref, b1_ref, w2_ref, b2_ref, o_ref):
    """Fused 2-layer MLP tile: sigmoid(relu(x @ W1 + b1) @ W2 + b2)."""
    x = x_ref[...]                                            # (tb, in_p)
    if x.dtype != w1_ref.dtype:
        x = x.astype(w1_ref.dtype)
    # linear1 + ReLU (f32 MXU accumulation)
    h = jnp.dot(x, w1_ref[...], preferred_element_type=jnp.float32)
    h = jnp.maximum(h + b1_ref[...], 0.0)                     # broadcast (1, mid_p)
    if h.dtype != w2_ref.dtype:
        h = h.astype(w2_ref.dtype)
    # linear2
    z = jnp.dot(h, w2_ref[...], preferred_element_type=jnp.float32)
    z = z + b2_ref[...]                                       # broadcast (1, out_p)
    # Exact sigmoid via tanh: a single EUP push per element.
    o_ref[...] = (0.5 * jnp.tanh(0.5 * z) + 0.5).astype(o_ref.dtype)


def prepare_params(w1, b1, w2, b2, *, param_dtype=jnp.float32):
    """One-time glue done OUTSIDE the per-call forward.

    Transpose weights to (in, out) lane-dense layout and zero-pad all feature
    dims up to multiples of 128 so matmuls and stores are lane-dense.
    Use param_dtype=jnp.bfloat16 on v6e/v7x to halve weight bytes/VMEM.
    """
    mid, in_f = w1.shape
    out_f = w2.shape[0]
    in_p = _round_up(in_f, _LANE)
    mid_p = _round_up(mid, _LANE)
    out_p = _round_up(out_f, _LANE)

    w1_t = jnp.zeros((in_p, mid_p), param_dtype)
    w1_t = w1_t.at[:in_f, :mid].set(jnp.transpose(w1).astype(param_dtype))
    w2_t = jnp.zeros((mid_p, out_p), param_dtype)
    w2_t = w2_t.at[:mid, :out_f].set(jnp.transpose(w2).astype(param_dtype))
    b1_r = jnp.zeros((1, mid_p), jnp.float32).at[:, :mid].set(b1.reshape(1, mid))
    b2_r = jnp.zeros((1, out_p), jnp.float32).at[:, :out_f].set(b2.reshape(1, out_f))
    return w1_t, b1_r, w2_t, b2_r


def _vmem_budget_bytes():
    """Generation-aware VMEM budget (capacity minus headroom)."""
    try:
        cap = int(pltpu.get_tpu_info().vmem_capacity_bytes)
    except Exception:
        cap = 64 * 2**20          # conservative fallback (safe on all gens)
    return max(cap - 16 * 2**20, 32 * 2**20)


@functools.partial(jax.jit, static_argnames=("out_features", "tile_b"))
def fa_autoencoder_forward(x, w1_t, b1_r, w2_t, b2_r, *, out_features, tile_b=None):
    """x: (B, in_features); prepared params from prepare_params()."""
    B, in_f = x.shape
    in_p, mid_p = w1_t.shape
    _, out_p = w2_t.shape

    act_i = jnp.dtype(x.dtype).itemsize
    par_i = jnp.dtype(w1_t.dtype).itemsize
    # Sublane minimum: 8 rows for f32, 16 for bf16 activations.
    sub = 16 if act_i == 2 else 8

    budget = _vmem_budget_bytes()
    # Weights/biases are single-buffered (pl.Buffered(1), constant index_map).
    resident = (in_p * mid_p + mid_p * out_p) * par_i + (mid_p + out_p) * 4
    # Per batch-row VMEM: up to 3 x pipeline bufs, double-buffered y, f32 h,
    # plus a narrow cast copy of h when params are sub-f32.
    per_row = (3 * in_p * act_i + 2 * out_p * act_i + mid_p * 4
               + (mid_p * par_i if par_i < 4 else 0))
    slack = 4 * 2**20
    tile_cap = max(sub, ((budget - resident - slack) // max(per_row, 1)) // sub * sub)

    if tile_b is None:
        if B >= 2 * sub:
            # >=2 grid steps so the "parallel" batch axis engages both TCs on v7x.
            tile_b = _round_up(-(-B // 2), sub)
        else:
            tile_b = _round_up(B, sub)
        tile_b = min(tile_b, 512)
    tile_b = max(sub, min(_round_up(tile_b, sub), tile_cap))
    b_pad = _round_up(B, tile_b)
    grid_b = b_pad // tile_b

    # Skip the HBM pad round-trip when x already conforms (common aligned case).
    if b_pad == B and in_f == in_p:
        x_p = x
    else:
        x_p = jnp.zeros((b_pad, in_p), x.dtype).at[:B, :in_f].set(x)

    resident_mode = pl.Buffered(1)
    x_spec_kwargs = {"pipeline_mode": pl.Buffered(3)} if grid_b >= 4 else {}

    vmem_need = resident + tile_b * per_row
    vmem_limit = int(min(budget, max(int(1.5 * vmem_need), 32 * 2**20)))

    cost = pl.CostEstimate(
        flops=2 * b_pad * (in_p * mid_p + mid_p * out_p),
        transcendentals=b_pad * out_p,
        bytes_accessed=(b_pad * (in_p + out_p) * act_i
                        + (in_p * mid_p + mid_p * out_p) * par_i
                        + (mid_p + out_p) * 4),
    )

    y_p = pl.pallas_call(
        _fa_autoencoder_kernel,
        out_shape=jax.ShapeDtypeStruct((b_pad, out_p), x.dtype),
        grid_spec=pltpu.PrefetchScalarGridSpec(
            num_scalar_prefetch=0,
            grid=(grid_b,),
            in_specs=[
                pl.BlockSpec((tile_b, in_p), lambda i: (i, 0), **x_spec_kwargs),
                pl.BlockSpec((in_p, mid_p), lambda i: (0, 0),
                             pipeline_mode=resident_mode),                  # W1^T
                pl.BlockSpec((1, mid_p), lambda i: (0, 0),
                             pipeline_mode=resident_mode),                  # b1
                pl.BlockSpec((mid_p, out_p), lambda i: (0, 0),
                             pipeline_mode=resident_mode),                  # W2^T
                pl.BlockSpec((1, out_p), lambda i: (0, 0),
                             pipeline_mode=resident_mode),                  # b2
            ],
            out_specs=pl.BlockSpec((tile_b, out_p), lambda i: (i, 0)),
        ),
        compiler_params=pltpu.CompilerParams(
            dimension_semantics=("parallel",),
            vmem_limit_bytes=vmem_limit),
        cost_estimate=cost,
    )(x_p, w1_t, b1_r, w2_t, b2_r)

    # Skip the output slice copy when the result already conforms.
    if b_pad == B and out_features == out_p:
        return y_p
    return y_p[:B, :out_features]


def init_params(key, in_features, middle_neuron, out_features):
    """Init mirroring FAModule.__init__ (kaiming_uniform a=sqrt(5), zero bias).

    bound = sqrt(6 / ((1 + a^2) * fan_in)) = 1/sqrt(fan_in). weight_fa is
    backward-only and not needed for the forward pass.
    """
    k1, k2 = jax.random.split(key)
    bound1 = 1.0 / math.sqrt(in_features)
    bound2 = 1.0 / math.sqrt(middle_neuron)
    w1 = jax.random.uniform(k1, (middle_neuron, in_features), jnp.float32,
                            -bound1, bound1)
    w2 = jax.random.uniform(k2, (out_features, middle_neuron), jnp.float32,
                            -bound2, bound2)
    b1 = jnp.zeros((middle_neuron,), jnp.float32)
    b2 = jnp.zeros((out_features,), jnp.float32)
    return w1, b1, w2, b2


def _reference_forward(x, w1, b1, w2, b2):
    h = jnp.maximum(x @ w1.T + b1, 0.0)
    z = h @ w2.T + b2
    return 1.0 / (1.0 + jnp.exp(-z))


if __name__ == "__main__":
    key = jax.random.PRNGKey(0)
    k_in, k_p = jax.random.split(key)

    # Small autoencoder: batch=16, in_features=64, middle=32, out_features=64.
    B, IN, MID, OUT = 16, 64, 32, 64
    x = jax.random.normal(k_in, (B, IN), jnp.float32)
    w1, b1, w2, b2 = init_params(k_p, IN, MID, OUT)

    # One-time layout prep (transpose + pad), then the fused forward kernel.
    # (For v6e/v7x: prepare_params(..., param_dtype=jnp.bfloat16) and cast x
    #  to bf16 to halve streamed bytes; f32 here for exact PyTorch parity.)
    w1_t, b1_r, w2_t, b2_r = prepare_params(w1, b1, w2, b2)
    y = fa_autoencoder_forward(x, w1_t, b1_r, w2_t, b2_r, out_features=OUT)
    y = jax.block_until_ready(y)

    y_ref = _reference_forward(x, w1, b1, w2, b2)
    assert y.shape == (B, OUT)
    assert jnp.allclose(y, y_ref, atol=5e-3, rtol=5e-3), "mismatch vs reference"

    print("KERNEL_OK")
</pallas_src>

<mosaic_0001>
module attributes {stable_mosaic.version = 11 : i64} {
  func.func @_fa_autoencoder_kernel(%arg0: i32, %arg1: memref<8x128xf32, #tpu.memory_space<vmem>>, %arg2: memref<128x128xf32, #tpu.memory_space<vmem>>, %arg3: memref<1x128xf32, #tpu.memory_space<vmem>>, %arg4: memref<128x128xf32, #tpu.memory_space<vmem>>, %arg5: memref<1x128xf32, #tpu.memory_space<vmem>>, %arg6: memref<8x128xf32, #tpu.memory_space<vmem>>) attributes {dimension_semantics = [#tpu.dimension_semantics<parallel>], iteration_bounds = array<i64: 2>, scalar_prefetch = 0 : i64, scratch_operands = 0 : i64, tpu.core_type = #tpu.core_type<tc>, window_params = [{transform_indices = @transform_0, window_bounds = array<i64: 8, 128>}, {pipeline_mode = #tpu.pipeline_mode<synchronous>, transform_indices = @transform_1, window_bounds = array<i64: 128, 128>}, {pipeline_mode = #tpu.pipeline_mode<synchronous>, transform_indices = @transform_2, window_bounds = array<i64: 1, 128>}, {pipeline_mode = #tpu.pipeline_mode<synchronous>, transform_indices = @transform_3, window_bounds = array<i64: 128, 128>}, {pipeline_mode = #tpu.pipeline_mode<synchronous>, transform_indices = @transform_4, window_bounds = array<i64: 1, 128>}, {transform_indices = @transform_5, window_bounds = array<i64: 8, 128>}]} {
    %c0 = arith.constant 0 : index
    %c0_0 = arith.constant 0 : index
    %0 = vector.load %arg1[%c0, %c0_0] : memref<8x128xf32, #tpu.memory_space<vmem>>, vector<8x128xf32>
    %c0_1 = arith.constant 0 : index
    %c0_2 = arith.constant 0 : index
    %1 = vector.load %arg2[%c0_1, %c0_2] : memref<128x128xf32, #tpu.memory_space<vmem>>, vector<128x128xf32>
    %cst = arith.constant dense<0.000000e+00> : vector<8x128xf32>
    %2 = tpu.matmul %0, %1, %cst {dimension_numbers = #tpu.dot_dimension_numbers<[1], [0], [0], [1], [0, 0, 1, 1], [], []>} : vector<8x128xf32>, vector<128x128xf32>, vector<8x128xf32> -> vector<8x128xf32>
    %c0_3 = arith.constant 0 : index
    %c0_4 = arith.constant 0 : index
    %3 = vector.load %arg3[%c0_3, %c0_4] : memref<1x128xf32, #tpu.memory_space<vmem>>, vector<1x128xf32>
    %4 = vector.broadcast %3 : vector<1x128xf32> to vector<8x128xf32>
    %5 = arith.addf %2, %4 : vector<8x128xf32>
    %cst_5 = arith.constant 0.000000e+00 : f32
    %6 = vector.broadcast %cst_5 : f32 to vector<8x128xf32>
    %7 = arith.maximumf %5, %6 : vector<8x128xf32>
    %c0_6 = arith.constant 0 : index
    %c0_7 = arith.constant 0 : index
    %8 = vector.load %arg4[%c0_6, %c0_7] : memref<128x128xf32, #tpu.memory_space<vmem>>, vector<128x128xf32>
    %cst_8 = arith.constant dense<0.000000e+00> : vector<8x128xf32>
    %9 = tpu.matmul %7, %8, %cst_8 {dimension_numbers = #tpu.dot_dimension_numbers<[1], [0], [0], [1], [0, 0, 1, 1], [], []>} : vector<8x128xf32>, vector<128x128xf32>, vector<8x128xf32> -> vector<8x128xf32>
    %c0_9 = arith.constant 0 : index
    %c0_10 = arith.constant 0 : index
    %10 = vector.load %arg5[%c0_9, %c0_10] : memref<1x128xf32, #tpu.memory_space<vmem>>, vector<1x128xf32>
    %11 = vector.broadcast %10 : vector<1x128xf32> to vector<8x128xf32>
    %12 = arith.addf %9, %11 : vector<8x128xf32>
    %cst_11 = arith.constant 5.000000e-01 : f32
    %13 = vector.broadcast %cst_11 : f32 to vector<8x128xf32>
    %14 = arith.mulf %13, %12 : vector<8x128xf32>
    %15 = math.tanh %14 : vector<8x128xf32>
    %cst_12 = arith.constant 5.000000e-01 : f32
    %16 = vector.broadcast %cst_12 : f32 to vector<8x128xf32>
    %17 = arith.mulf %16, %15 : vector<8x128xf32>
    %cst_13 = arith.constant 5.000000e-01 : f32
    %18 = vector.broadcast %cst_13 : f32 to vector<8x128xf32>
    %19 = arith.addf %17, %18 : vector<8x128xf32>
    %c0_14 = arith.constant 0 : index
    %c0_15 = arith.constant 0 : index
    %20 = vector.load %arg6[%c0_14, %c0_15] : memref<8x128xf32, #tpu.memory_space<vmem>>, vector<8x128xf32>
    tpu.vector_store %arg6[%c0_14, %c0_15], %19 {strides = array<i32>} : memref<8x128xf32, #tpu.memory_space<vmem>>, vector<8x128xf32>,
    return
  }
  func.func @transform_0(%arg0: i32) -> (i32, i32) {
    %c0_i32 = arith.constant 0 : i32
    %c0_i32_0 = arith.constant 0 : i32
    return %arg0, %c0_i32 : i32, i32
  }
  func.func @transform_1(%arg0: i32) -> (i32, i32) {
    %c0_i32 = arith.constant 0 : i32
    %c0_i32_0 = arith.constant 0 : i32
    %c0_i32_1 = arith.constant 0 : i32
    return %c0_i32, %c0_i32_0 : i32, i32
  }
  func.func @transform_2(%arg0: i32) -> (i32, i32) {
    %c0_i32 = arith.constant 0 : i32
    %c0_i32_0 = arith.constant 0 : i32
    %c0_i32_1 = arith.constant 0 : i32
    return %c0_i32, %c0_i32_0 : i32, i32
  }
  func.func @transform_3(%arg0: i32) -> (i32, i32) {
    %c0_i32 = arith.constant 0 : i32
    %c0_i32_0 = arith.constant 0 : i32
    %c0_i32_1 = arith.constant 0 : i32
    return %c0_i32, %c0_i32_0 : i32, i32
  }
  func.func @transform_4(%arg0: i32) -> (i32, i32) {
    %c0_i32 = arith.constant 0 : i32
    %c0_i32_0 = arith.constant 0 : i32
    %c0_i32_1 = arith.constant 0 : i32
    return %c0_i32, %c0_i32_0 : i32, i32
  }
  func.func @transform_5(%arg0: i32) -> (i32, i32) {
    %c0_i32 = arith.constant 0 : i32
    %c0_i32_0 = arith.constant 0 : i32
    return %arg0, %c0_i32 : i32, i32
  }
}

</mosaic_0001>

<bundles_post_ra>
// kernel: fa_autoencoder_forward.1
= control target key start
LH: loop header
LB: loop body
LE: loop exit
PB: predicated region body
PF: predicated region fallthrough
CT: control target
= control target key end

     0   :  { %10 = vsyncpa [#allocation3], 0  ;;  %s800_s0 = inlined_call_operand.vmem [shape: f32[16,128], index: 0, kind: input, shape index: {}]   ;;  %s801_s1 = inlined_call_operand.hbm [shape: f32[128,128], index: 1, kind: input, shape index: {}]   ;;  %s802_s2 = inlined_call_operand.vmem [shape: f32[1,128], index: 2, kind: input, shape index: {}]   ;;  %s803_s3 = inlined_call_operand.hbm [shape: f32[128,128], index: 3, kind: input, shape index: {}]   ;;  %s804_s4 = inlined_call_operand.vmem [shape: f32[1,128], index: 4, kind: input, shape index: {}]   ;;  %s805_s5 = inlined_call_operand.hbm [shape: f32[16,128], index: 5, kind: output, shape index: {}]  }
   0x1   :  { %11 = vsyncpa [#allocation6], 0 }
   0x2   :  { %12 = vsyncpa [#allocation4], 0 }
   0x3   :  { %14 = vsyncpa [#allocation4 + $0x1], 0  ;;  %s684_s18 = smov 0   ;;  %s686_s19 = smov 0  }
   0x4   :  { %s688_s20 = smov 0   ;;  %s690_s21 = smov 0  }
   0x5 LB: > { %s705_s22 = sadd.s32 4294967295, %s648_s21   ;;  %s438_s23 = sadd.s32 4294967294, %s648_s21   ;;  %s648_s21 = sphi %s690_s21, %s812_s21   ;;  %s644_s20 = sphi %s688_s20, %s811_s20   ;;  %s640_s19 = sphi %s686_s19, %s810_s19   ;;  %s636_s18 = sphi %s684_s18, %s809_s18  }
   0x6   : > { %s709_s24 = sadd.s32 1, %s648_s21   ;;  %s137_s25 = sadd.s32 1, %s644_s20 }
   0x7   : > { %s134_s26 = ssub.s32 %s648_s21, %s709_s24  ;;  %p147_p0 = scmp.ne.s32.totalorder %s644_s20, %s640_s19 }
   0x8   : > { %p135_p1 = scmp.eq.s32.totalorder %s134_s26, 0  ;;  %p148_p2 = scmp.eq.s32.totalorder %s705_s22, 1 }
   0x9   : > { %p153_p3 = scmp.ne.s32.totalorder %s640_s19, %s636_s18  ;;  %p154_p4 = scmp.eq.s32.totalorder %s438_s23, 1 }
   0xa   : > { %s720_s27 = scalar_select %p135_p1, %s644_s20, %s137_s25  }
   0xb   : > { %p722_p5 = por %p148_p2, %p147_p0  ;;  %p726_p6 = por %p154_p4, %p153_p3 }
   0xc   : > { %p439_p7 = scmp.ge.s32.totalorder %s648_s21, 1  ;;  %p161_p8 = scmp.lt.s32.totalorder %s648_s21, 3 }
   0xd   : > { %p473_p9 = scmp.eq.s32.totalorder %s705_s22, 0  ;;  %s172_s8 = sshll.u32 %s801_s1, 4  ;;  %s173_s8 = int_to_ptr.hbm [resolvable:$true] %s172_s8 }
   0xe   : > { %p733_p10 = pnand %p439_p7, %p161_p8  ;;  %s650_s9 = smov [#allocation2]  }
   0xf   : > { %s174_s10 = sshll.u32 %s650_s9, 4  ;;  %s189_s13 = sshll.u32 %s803_s3, 4  ;;  %s175_s10 = int_to_ptr.vmem [resolvable:$true] %s174_s10  ;;  %s190_s13 = int_to_ptr.hbm [resolvable:$true] %s189_s13 }
  0x10   : > { %p462_p11 = pneg %p733_p10  ;;  %s651_s14 = smov 128  }
  0x11   : > { %s652_s15 = smov 8   ;;  %s653_s16 = smov [#allocation5]  }
  0x12   : > { %p463_p12 = pnand %p473_p9, %p462_p11  ;;  %s191_s17 = sshll.u32 %s653_s16, 4  ;;  %s192_s17 = int_to_ptr.vmem [resolvable:$true] %s191_s17 }
  0x13   : > { %217 = sbr.rel (%p733_p10) target bundleno = 333 (0x14d), region = 40 }
  0x14   : > { %465 = dma.hbm_to_vmem [thread:$0]  (!%p463_p12), %s173_s8, 2048, %s175_s10, [#allocation3], %s651_s14, %s651_s14, %s652_s15  }
  0x15   : > { %468 = dma.hbm_to_vmem [thread:$0]  (!%p463_p12), %s190_s13, 2048, %s192_s17, [#allocation6], %s651_s14, %s651_s14, %s652_s15  }
  0x18   : > { %623 = dma.done.wait (%p473_p9), [#allocation3], 2048  }
  0x19   : > { %625 = vsyncadd (%p473_p9), [#allocation3], 4294965248 }
  0x1a   : > { %627 = dma.done.wait (%p473_p9), [#allocation6], 2048  }
  0x1b   : > { %629 = vsyncadd (%p473_p9), [#allocation6], 4294965248  ;;  %v270_v0 = vld [vmem:[#allocation2 + $0x78] sm:$0xff]  ;;  %v269_v1 = vld [vmem:[#allocation2 + $0x70] sm:$0xff]  ;;  %p250_p13 = scmp.lt.s32.totalorder %s705_s22, 1  ;;  %s247_s11 = sand.u32 1, %s640_s19  }
  0x1c   : > { %275 = vmatpush.msra.mxu0 %v270_v0  ;;  %v268_v2 = vld [vmem:[#allocation2 + $0x68] sm:$0xff]  ;;  %v267_v3 = vld [vmem:[#allocation2 + $0x60] sm:$0xff]  ;;  %v311_v4 = vld [vmem:[#allocation5 + $0x78] sm:$0xff]  ;;  %s446_s12 = sshll.u32 %s247_s11, 3  ;;  %s449_s13 = sshll.u32 %s705_s22, 3 }
  0x1d   : > { %v266_v5 = vld [vmem:[#allocation2 + $0x58] sm:$0xff]  ;;  %316 = vmatpush.msra.mxu1 %v311_v4  ;;  %v310_v6 = vld [vmem:[#allocation5 + $0x70] sm:$0xff]  ;;  %v309_v7 = vld [vmem:[#allocation5 + $0x68] sm:$0xff]  ;;  %s251_s23 = scalar_select %p250_p13, %s705_s22, 1 }
  0x1e   : > { %276 = vmatpush.msra.mxu0 %v269_v1  ;;  %v265_v8 = vld [vmem:[#allocation2 + $0x50] sm:$0xff]  ;;  %v308_v9 = vld [vmem:[#allocation5 + $0x60] sm:$0xff]  ;;  %v264_v10 = vld [vmem:[#allocation2 + $0x48] sm:$0xff]  ;;  %s352_s16 = scalar_lea.hbm %s805_s5, %s449_s13  ;;  %s249_s17 = scalar_lea.vmem [#allocation7], %s446_s12 }
  0x1f   : > { %317 = vmatpush.msra.mxu1 %v310_v6  ;;  %v307_v11 = vld [vmem:[#allocation5 + $0x58] sm:$0xff]  ;;  %v263_v12 = vld [vmem:[#allocation2 + $0x40] sm:$0xff]  ;;  %v306_v13 = vld [vmem:[#allocation5 + $0x50] sm:$0xff]  ;;  %s447_s25 = sshll.u32 %s251_s23, 3  ;;  %s354_s23 = sshll.u32 %s249_s17, 4  ;;  %s355_s23 = int_to_ptr.vmem [resolvable:$true] %s354_s23 }
  0x20   : > { %277 = vmatpush.msra.mxu0 %v268_v2  ;;  %v262_v14 = vld [vmem:[#allocation2 + $0x38] sm:$0xff]  ;;  %v305_v15 = vld [vmem:[#allocation5 + $0x48] sm:$0xff]  ;;  %v261_v16 = vld [vmem:[#allocation2 + $0x30] sm:$0xff]  ;;  %s253_s6 = scalar_lea.vmem %s800_s0, %s447_s25  ;;  %s356_s25 = sshll.u32 %s352_s16, 4  ;;  %s357_s25 = int_to_ptr.hbm [resolvable:$true] %s356_s25 }
  0x21   : > { %318 = vmatpush.msra.mxu1 %v309_v7  ;;  %v304_v17 = vld [vmem:[#allocation5 + $0x40] sm:$0xff]  ;;  %v260_v18 = vld [vmem:[#allocation2 + $0x28] sm:$0xff]  ;;  %v303_v19 = vld [vmem:[#allocation5 + $0x38] sm:$0xff]  ;;  %s342_s26 = scalar_lea.sflag [#allocation4], %s247_s11  ;;  %s592_s30 = sshra.s32 %s357_s25, 4  ;;  %s593_s30 = int_to_ptr.hbm [resolvable:$true] %s592_s30 }
  0x22   : > { %278 = vmatpush.msra.mxu0 %v267_v3  ;;  %v259_v20 = vld [vmem:[#allocation2 + $0x20] sm:$0xff]  ;;  %v302_v21 = vld [vmem:[#allocation5 + $0x30] sm:$0xff]  ;;  %v258_v22 = vld [vmem:[#allocation2 + $0x18] sm:$0xff]  ;;  %s598_s8 = scalar_lea.hbm %s805_s5, 16  ;;  %p599_p3 = scmp.lt.s32.totalorder %s593_s30, %s805_s5 }
  0x23   : > { %319 = vmatpush.msra.mxu1 %v308_v9  ;;  %v301_v23 = vld [vmem:[#allocation5 + $0x28] sm:$0xff]  ;;  %v257_v24 = vld [vmem:[#allocation2 + $0x10] sm:$0xff]  ;;  %v300_v25 = vld [vmem:[#allocation5 + $0x20] sm:$0xff] }
  0x24   : > { %279 = vmatpush.msra.mxu0 %v266_v5  ;;  %v256_v26 = vld [vmem:[#allocation2 + $0x8] sm:$0xff]  ;;  %v299_v27 = vld [vmem:[#allocation5 + $0x18] sm:$0xff]  ;;  %v255_v28 = vld [vmem:[#allocation2] sm:$0xff] }
  0x25   : > { %320 = vmatpush.msra.mxu1 %v307_v11  ;;  %v254_v29 = vld [vmem:[%s253_s6] sm:$0xff]  ;;  %v298_v30 = vld [vmem:[#allocation5 + $0x10] sm:$0xff]  ;;  %v297_v31 = vld [vmem:[#allocation5 + $0x8] sm:$0xff]  ;;  %s594_s6 = scalar_lea.hbm %s593_s30, 8 }
  0x26   : > { %280 = vmatpush.msra.mxu0 %v265_v8  ;;  %v296_v32 = vld [vmem:[#allocation5] sm:$0xff]  ;;  %p595_p0 = scmp.ne.s32.totalorder %s593_s30, %s594_s6  ;;  %p600_p4 = scmp.lt.s32.totalorder %s598_s8, %s594_s6 }
  0x27   : > { %321 = vmatpush.msra.mxu1 %v306_v13  ;;  %v514_v33 = vld [vmem:[%s802_s2] ss:$0 sm:$0xff] }
  0x28   : > { %281 = vmatpush.msra.mxu0 %v264_v10  ;;  %v515_v37 = vld [vmem:[%s804_s4] ss:$0 sm:$0xff]  ;;  %p596_p1 = pnand %p595_p0, %p722_p5  ;;  %p601_p7 = por %p600_p4, %p599_p3 }
  0x29   : > { %322 = vmatpush.msra.mxu1 %v305_v15 }
  0x2a   : > { %282 = vmatpush.msra.mxu0 %v263_v12  ;;  %p597_p2 = pneg %p596_p1 }
  0x2b   : > { %323 = vmatpush.msra.mxu1 %v304_v17 }
  0x2c   : > { %283 = vmatpush.msra.mxu0 %v262_v14  ;;  %p602_p8 = pnand %p601_p7, %p597_p2 }
  0x2d   : > { %324 = vmatpush.msra.mxu1 %v303_v19 }
  0x2e   : > { %284 = vmatpush.msra.mxu0 %v261_v16 }
  0x2f   : > { %325 = vmatpush.msra.mxu1 %v302_v21 }
  0x30   : > { %285 = vmatpush.msra.mxu0 %v260_v18 }
  0x31   : > { %326 = vmatpush.msra.mxu1 %v301_v23 }
  0x32   : > { %286 = vmatpush.msra.mxu0 %v259_v20 }
  0x33   : > { %327 = vmatpush.msra.mxu1 %v300_v25 }
  0x34   : > { %287 = vmatpush.msra.mxu0 %v258_v22 }
  0x35   : > { %328 = vmatpush.msra.mxu1 %v299_v27 }
  0x36   : > { %288 = vmatpush.msra.mxu0 %v257_v24 }
  0x37   : > { %329 = vmatpush.msra.mxu1 %v298_v30 }
  0x38   : > { %289 = vmatpush.msra.mxu0 %v256_v26 }
  0x39   : > { %330 = vmatpush.msra.mxu1 %v297_v31 }
  0x3a   : > { %290 = vmatpush.msra.mxu0 %v255_v28 }
  0x3b   : > { %291 = vmatmul.f32.vlgmr.msra.gmra.mxu0 %v254_v29  ;;  %331 = vmatpush.msra.mxu1 %v296_v32 }
  0xb8   : > { %v292_v34 = vpop.f32.mrf.mxu0 }
  0xb9   : > { %v293_v35 = vadd.f32 %v514_v33, %v292_v34 }
  0xbb   : > { %v295_v36 = vmax.f32 %v293_v35, 0.0 }
  0xbd   : > { %332 = vmatmul.f32.vlgmr.msra.gmra.mxu1 %v295_v36 }
 0x13a   : > { %v333_v38 = vpop.f32.mrf.mxu1 }
 0x13b   : > { %v334_v39 = vadd.f32 %v515_v37, %v333_v38 }
 0x13d   : > { %v336_v40 = vmul.f32 0.5, %v334_v39 }
 0x13f   : > { %516 = vtanh.f32 %v336_v40 }
 0x145   : > { %v517_v41 = vpop.eup %516 }
 0x146   : > { %v338_v42 = vmul.f32 0.5, %v517_v41 }
 0x148   : > { %v339_v43 = vadd.f32 0.5, %v338_v42 }
 0x14a   : > { %340 = vst [vmem:[%s249_s17] sm:$0xff] %v339_v43 }
 0x14b   : > { %605 = shalt.err (!%p602_p8)
}
 0x14c   : > { %460 = dma.vmem_to_hbm [thread:$0]  (%p722_p5), %s355_s23, 128, %s357_s25, %s342_s26  }
 0x14d PF: > { %p477_p9 = scmp.ge.s32.totalorder %s648_s21, 2  ;;  %s368_s11 = sand.u32 1, %s636_s18  }
 0x14e   : > { %s369_s12 = scalar_lea.sflag [#allocation4], %s368_s11 }
 0x14f   : > { %p470_p10 = pnand %p477_p9, %p726_p6 }
 0x151   : > { %p471_p11 = pneg %p470_p10 }
 0x153   : > { %631 = dma.done.wait (%p471_p11), %s369_s12, 128  }
 0x154   : > { %633 = vsyncadd (%p471_p11), %s369_s12, 4294967168  ;;  %p17_p12 = scmp.ge.s32.totalorder %s709_s24, 4   ;;  %s809_s18 = smov %s640_s19 }
 0x155   : > { %s810_s19 = smov %s644_s20  ;;  %s811_s20 = smov %s720_s27 }
 0x156   : > { %s812_s21 = smov %s709_s24  ;;  %19 = sbr.rel (!%p17_p12) target bundleno = 5 (0x5), region = 84 }
 0x15b   :  { %375 = vsyncpa [#allocation3], 1 }
 0x15c   :  { %377 = vsyncpa [#allocation3 + $0x1], 1 }
 0x15d   :  { %378 = vsyncpa [#allocation6], 1 }
 0x15e   :  { %379 = vsyncpa [#allocation4], 1 }
 0x15f   :  { %381 = vsyncpa [#allocation4 + $0x1], 1 }

</bundles_post_ra>
